<compile_context>
chip_gen: v5e
topology: v5e:2x2
jax: 0.10.0
libtpu: 0.0.40
codegen_flags: <defaults>
</compile_context>

<pallas_src>
import functools

import jax
import jax.numpy as jnp
from jax import lax
from jax.experimental import pallas as pl
from jax.experimental.pallas import tpu as pltpu


def _cdiv(a, b):
    return (a + b - 1) // b


def _round_up(x, m):
    return ((x + m - 1) // m) * m


def _chip_kind():
    """Best-effort TPU generation detection (perf-only; any fallback is safe)."""
    try:
        dk = jax.devices()[0].device_kind.lower()
    except Exception:
        dk = ""
    if "v5 lite" in dk or "v5lite" in dk or "v5e" in dk:
        return "v5e"
    if "v6" in dk:
        return "v6e"
    if "7x" in dk or "v7" in dk:
        return "v7x"
    return "other"


def _default_tiles(chip, itemsize):
    # Output-stationary tiling: big (tm, tn) for x/W reuse, tk small enough to
    # give several pipelined K steps. f32 inputs halve the output tile.
    if chip == "v5e":
        tm, tn, tk = 512, 512, 512      # lower ridge (~240 flop/B), 128x128 MXU
    elif chip == "v7x":
        tm, tn, tk = 512, 1024, 512     # budgeted against 64 MiB physical VMEM
    else:                               # v6e / unknown
        tm, tn, tk = 1024, 1024, 512
    if itemsize >= 4:
        tm = max(tm // 2, 256)
        tn = max(tn // 2, 512)
    return tm, tn, tk


def _apply_mask_act(x, x_ref, k_off, k_valid, mask_k, use_activation, tanh_in_f32):
    if mask_k:
        # Zero ragged-K columns so OOB garbage never reaches tanh / the MXU
        # (the weight is zero-padded along K, so the product stays exact).
        col = k_off + lax.broadcasted_iota(jnp.int32, x.shape, 1)
        x = jnp.where(col < k_valid, x, jnp.zeros_like(x))
    if use_activation:
        if tanh_in_f32 and x.dtype != jnp.float32:
            # v5e EUP has no bf16 tanh: round-trip through f32 there only.
            x = jnp.tanh(x.astype(jnp.float32)).astype(x_ref.dtype)
        else:
            x = jnp.tanh(x)
    return x


def _fc_kernel_single(x_ref, w_ref, b_ref, o_ref, *,
                      use_activation, tanh_in_f32, k_valid, mask_k):
    # Fast path: K fits in one tile -> no f32 accumulator scratch needed.
    x = _apply_mask_act(x_ref[...], x_ref, 0, k_valid, mask_k,
                        use_activation, tanh_in_f32)
    acc = jnp.dot(x, w_ref[...], preferred_element_type=jnp.float32)
    o_ref[...] = (acc + b_ref[...].astype(jnp.float32)).astype(o_ref.dtype)


def _fc_kernel_multi(x_ref, w_ref, b_ref, o_ref, acc_ref, *,
                     use_activation, tanh_in_f32, k_valid, tk, mask_k):
    k = pl.program_id(2)

    @pl.when(k == 0)
    def _():
        acc_ref[...] = jnp.zeros_like(acc_ref)

    x = _apply_mask_act(x_ref[...], x_ref, k * tk, k_valid, mask_k,
                        use_activation, tanh_in_f32)
    acc_ref[...] += jnp.dot(x, w_ref[...], preferred_element_type=jnp.float32)

    @pl.when(k == pl.num_programs(2) - 1)
    def _():
        o_ref[...] = (acc_ref[...] + b_ref[...].astype(jnp.float32)
                      ).astype(o_ref.dtype)


def fc_layer(x, weight, bias, use_activation=True, *, tm=None, tn=None, tk=None):
    """FCLayer forward.

    x:      (B, input_dim)
    weight: (output_dim, input_dim)  -- PyTorch nn.Linear layout
    bias:   (output_dim,)
    """
    B, K = x.shape
    N, Kw = weight.shape
    assert K == Kw, "weight.shape[1] must equal x.shape[1]"

    chip = _chip_kind()
    itemsize = x.dtype.itemsize
    dtm, dtn, dtk = _default_tiles(chip, itemsize)
    user_tk = tk is not None
    tm = dtm if tm is None else tm
    tn = dtn if tn is None else tn
    tk = dtk if tk is None else tk

    # Clamp tiles: a block covering the full (ragged) dim is always legal;
    # otherwise keep the (sublane, 128-lane) grain. Sublane grain is dtype
    # aware (bf16 packs 2 rows per sublane, int8/fp8 pack 4).
    sub = 8 * max(1, 4 // max(1, itemsize))
    tm = min(tm, B)
    if tm < B:
        tm = max(sub, (tm // sub) * sub)
    tn = min(tn, N)
    if tn < N:
        tn = max(128, (tn // 128) * 128)
    tk = min(tk, K)
    if tk < K:
        tk = max(128, (tk // 128) * 128)
        # Aim for >= ~4 K steps per output tile so x/W DMAs overlap the MXU
        # (only when the caller did not pin tk; never grow tk).
        if not user_tk and _cdiv(K, tk) < 4:
            tk = max(128, min(tk, _round_up(_cdiv(K, 4), 128)))

    # v7x: 2 TensorCores are sharded over the "parallel" axes -> make sure the
    # output grid has at least 2 tiles so one core is not idle.
    if chip == "v7x" and _cdiv(B, tm) * _cdiv(N, tn) < 2:
        if N > 128 and tn >= 256:
            tn = max(128, _round_up(_cdiv(N, 2), 128))
        elif B > 2 * sub:
            tm = max(sub, _round_up(_cdiv(B, 2), sub))

    gm, gn, nk = _cdiv(B, tm), _cdiv(N, tn), _cdiv(K, tk)
    Kp, Np = nk * tk, gn * tn
    mask_k = (K % tk) != 0
    tanh_in_f32 = (chip == "v5e")

    # Weight: one-time transpose to (K, N) + zero-pad of the K/N edges. Both
    # fold away for static weights under jit; keeps the kernel a pure MXU dot
    # and guarantees padded-K rows are exact zeros (never NaN garbage).
    w_t = weight.T
    if (Kp, Np) != (K, N):
        w_t = jnp.pad(w_t, ((0, Kp - K), (0, Np - N)))
    b2 = bias.reshape(1, N)
    if Np != N:
        b2 = jnp.pad(b2, ((0, 0), (0, Np - N)))

    # Explicit VMEM budget: double-buffered x/W/out/bias blocks + f32 acc.
    fp = (2 * tm * tk * itemsize + 2 * tk * tn * w_t.dtype.itemsize
          + 2 * tm * tn * itemsize + 2 * tn * b2.dtype.itemsize
          + (tm * tn * 4 if nk > 1 else 0))
    phys = (64 << 20) if chip == "v7x" else (128 << 20)
    vmem_limit = int(min(phys - (8 << 20), max(32 << 20, fp + (16 << 20))))

    cost = pl.CostEstimate(
        flops=2 * B * K * N,
        transcendentals=(B * K * gn) if use_activation else 0,
        bytes_accessed=int(gn * B * K * itemsize
                           + gm * Kp * Np * w_t.dtype.itemsize
                           + Np * b2.dtype.itemsize
                           + B * N * itemsize),
    )

    if nk == 1:
        kernel = functools.partial(
            _fc_kernel_single, use_activation=use_activation,
            tanh_in_f32=tanh_in_f32, k_valid=K, mask_k=mask_k)
        grid = (gm, gn)
        in_specs = [
            pl.BlockSpec((tm, tk), lambda i, j: (i, 0)),   # x tile
            pl.BlockSpec((tk, tn), lambda i, j: (0, j)),   # W.T tile
            pl.BlockSpec((1, tn), lambda i, j: (0, j)),    # bias tile
        ]
        out_specs = pl.BlockSpec((tm, tn), lambda i, j: (i, j))
        scratch_shapes = []
        dims = ("parallel", "parallel")
    else:
        kernel = functools.partial(
            _fc_kernel_multi, use_activation=use_activation,
            tanh_in_f32=tanh_in_f32, k_valid=K, tk=tk, mask_k=mask_k)
        grid = (gm, gn, nk)
        in_specs = [
            pl.BlockSpec((tm, tk), lambda i, j, k: (i, k)),   # x tile
            pl.BlockSpec((tk, tn), lambda i, j, k: (k, j)),   # W.T tile
            pl.BlockSpec((1, tn), lambda i, j, k: (0, j)),    # bias tile
        ]
        out_specs = pl.BlockSpec((tm, tn), lambda i, j, k: (i, j))
        scratch_shapes = [pltpu.VMEM((tm, tn), jnp.float32)]
        dims = ("parallel", "parallel", "arbitrary")

    return pl.pallas_call(
        kernel,
        out_shape=jax.ShapeDtypeStruct((B, N), x.dtype),
        grid_spec=pltpu.PrefetchScalarGridSpec(
            num_scalar_prefetch=0,
            grid=grid,
            in_specs=in_specs,
            out_specs=out_specs,
            scratch_shapes=scratch_shapes,
        ),
        compiler_params=pltpu.CompilerParams(
            dimension_semantics=dims,
            vmem_limit_bytes=vmem_limit),
        cost_estimate=cost,
    )(x, w_t, b2)


if __name__ == "__main__":
    key = jax.random.PRNGKey(0)
    kx, kw, kb, kx2, kw2, kb2 = jax.random.split(key, 6)

    # --- Test 1: module-sized shapes, single-K fast path ------------------
    B, input_dim, output_dim = 8, 32, 32
    x = jax.random.normal(kx, (B, input_dim), dtype=jnp.float32)
    bound = 1.0 / jnp.sqrt(jnp.float32(input_dim))
    weight = jax.random.uniform(kw, (output_dim, input_dim),
                                minval=-bound, maxval=bound, dtype=jnp.float32)
    bias = jax.random.uniform(kb, (output_dim,),
                              minval=-bound, maxval=bound, dtype=jnp.float32)

    out = jax.block_until_ready(fc_layer(x, weight, bias, use_activation=True))
    ref = jnp.tanh(x) @ weight.T + bias
    assert out.shape == (B, output_dim)
    assert jnp.allclose(out, ref, atol=1e-5, rtol=1e-5)

    out_na = jax.block_until_ready(fc_layer(x, weight, bias, use_activation=False))
    ref_na = x @ weight.T + bias
    assert jnp.allclose(out_na, ref_na, atol=1e-5, rtol=1e-5)

    # --- Test 2: ragged dims, multi-K accumulator + edge masking path -----
    B2, K2, N2 = 12, 300, 136
    x2 = jax.random.normal(kx2, (B2, K2), dtype=jnp.float32)
    bound2 = 1.0 / jnp.sqrt(jnp.float32(K2))
    w2 = jax.random.uniform(kw2, (N2, K2), minval=-bound2, maxval=bound2,
                            dtype=jnp.float32)
    b2 = jax.random.uniform(kb2, (N2,), minval=-bound2, maxval=bound2,
                            dtype=jnp.float32)
    out2 = jax.block_until_ready(
        fc_layer(x2, w2, b2, use_activation=True, tm=8, tn=128, tk=128))
    ref2 = jnp.tanh(x2) @ w2.T + b2
    assert out2.shape == (B2, N2)
    assert jnp.allclose(out2, ref2, atol=1e-3, rtol=1e-3)

    print("KERNEL_OK")
</pallas_src>

<mosaic_0001>
module attributes {stable_mosaic.version = 11 : i64} {
  func.func @_fc_kernel_single(%arg0: i32, %arg1: i32, %arg2: memref<8x32xf32, #tpu.memory_space<vmem>>, %arg3: memref<32x32xf32, #tpu.memory_space<vmem>>, %arg4: memref<1x32xf32, #tpu.memory_space<vmem>>, %arg5: memref<8x32xf32, #tpu.memory_space<vmem>>) attributes {dimension_semantics = [#tpu.dimension_semantics<parallel>, #tpu.dimension_semantics<parallel>], iteration_bounds = array<i64: 1, 1>, scalar_prefetch = 0 : i64, scratch_operands = 0 : i64, tpu.core_type = #tpu.core_type<tc>, window_params = [{transform_indices = @transform_0, window_bounds = array<i64: 8, 32>}, {transform_indices = @transform_1, window_bounds = array<i64: 32, 32>}, {transform_indices = @transform_2, window_bounds = array<i64: 1, 32>}, {transform_indices = @transform_3, window_bounds = array<i64: 8, 32>}]} {
    %c0 = arith.constant 0 : index
    %c0_0 = arith.constant 0 : index
    %0 = vector.load %arg2[%c0, %c0_0] : memref<8x32xf32, #tpu.memory_space<vmem>>, vector<8x32xf32>
    %1 = math.tanh %0 : vector<8x32xf32>
    %c0_1 = arith.constant 0 : index
    %c0_2 = arith.constant 0 : index
    %2 = vector.load %arg3[%c0_1, %c0_2] : memref<32x32xf32, #tpu.memory_space<vmem>>, vector<32x32xf32>
    %cst = arith.constant dense<0.000000e+00> : vector<8x32xf32>
    %3 = tpu.matmul %1, %2, %cst {dimension_numbers = #tpu.dot_dimension_numbers<[1], [0], [0], [1], [0, 0, 1, 1], [], []>} : vector<8x32xf32>, vector<32x32xf32>, vector<8x32xf32> -> vector<8x32xf32>
    %c0_3 = arith.constant 0 : index
    %c0_4 = arith.constant 0 : index
    %4 = vector.load %arg4[%c0_3, %c0_4] : memref<1x32xf32, #tpu.memory_space<vmem>>, vector<1x32xf32>
    %5 = vector.broadcast %4 : vector<1x32xf32> to vector<8x32xf32>
    %6 = arith.addf %3, %5 : vector<8x32xf32>
    %c0_5 = arith.constant 0 : index
    %c0_6 = arith.constant 0 : index
    %7 = vector.load %arg5[%c0_5, %c0_6] : memref<8x32xf32, #tpu.memory_space<vmem>>, vector<8x32xf32>
    tpu.vector_store %arg5[%c0_5, %c0_6], %6 {strides = array<i32>} : memref<8x32xf32, #tpu.memory_space<vmem>>, vector<8x32xf32>,
    return
  }
  func.func @transform_0(%arg0: i32, %arg1: i32) -> (i32, i32) {
    %c0_i32 = arith.constant 0 : i32
    %c0_i32_0 = arith.constant 0 : i32
    return %arg0, %c0_i32 : i32, i32
  }
  func.func @transform_1(%arg0: i32, %arg1: i32) -> (i32, i32) {
    %c0_i32 = arith.constant 0 : i32
    %c0_i32_0 = arith.constant 0 : i32
    return %c0_i32, %arg1 : i32, i32
  }
  func.func @transform_2(%arg0: i32, %arg1: i32) -> (i32, i32) {
    %c0_i32 = arith.constant 0 : i32
    %c0_i32_0 = arith.constant 0 : i32
    return %c0_i32, %arg1 : i32, i32
  }
  func.func @transform_3(%arg0: i32, %arg1: i32) -> (i32, i32) {
    %c0_i32 = arith.constant 0 : i32
    return %arg0, %arg1 : i32, i32
  }
}

</mosaic_0001>

<bundles_post_ra>
// kernel: tpu_custom_call.1
= control target key start
LH: loop header
LB: loop body
LE: loop exit
PB: predicated region body
PF: predicated region fallthrough
CT: control target
= control target key end

     0   :  { %8 = vsyncpa [#allocation3], 0  ;;  %s222_s0 = inlined_call_operand.hbm [shape: f32[8,32], index: 0, kind: input, shape index: {}]   ;;  %s223_s1 = inlined_call_operand.hbm [shape: f32[32,32], index: 1, kind: input, shape index: {}]   ;;  %s224_s2 = inlined_call_operand.vmem [shape: f32[1,32], index: 2, kind: input, shape index: {}]   ;;  %s225_s3 = inlined_call_operand.hbm [shape: f32[8,32], index: 3, kind: output, shape index: {}]  }
   0x1   :  { %9 = vsyncpa [#allocation6], 0 }
   0x2   :  { %10 = vsyncpa [#allocation4], 0  ;;  %s16_s14 = sshll.u32 %s222_s0, 4  ;;  %s185_s15 = smov [#allocation2]   ;;  %s17_s14 = int_to_ptr.hbm [resolvable:$true] %s16_s14 }
   0x3   :  { %s18_s16 = sshll.u32 %s185_s15, 4  ;;  %s26_s19 = sshll.u32 %s223_s1, 4  ;;  %s19_s16 = int_to_ptr.vmem [resolvable:$true] %s18_s16  ;;  %s27_s19 = int_to_ptr.hbm [resolvable:$true] %s26_s19 }
   0x4   :  { %21 = dma.hbm_to_vmem [thread:$0]  %s17_s14, 128, %s19_s16, [#allocation3]  }
   0x5   :  { %s186_s20 = smov [#allocation5]   ;;  %s187_s22 = smov 128  }
   0x6   :  { %s28_s21 = sshll.u32 %s186_s20, 4  ;;  %s188_s23 = smov 8   ;;  %s29_s21 = int_to_ptr.vmem [resolvable:$true] %s28_s21 }
   0x7   :  { %34 = dma.hbm_to_vmem [thread:$0]  %s27_s19, 512, %s29_s21, [#allocation6], %s187_s22, %s187_s22, %s188_s23  }
   0x8   :  { %179 = dma.done.wait [#allocation3], 128  }
   0x9   :  { %180 = vsyncadd [#allocation3], 4294967168 }
   0xa   :  { %181 = dma.done.wait [#allocation6], 512  }
   0xb   :  { %182 = vsyncadd [#allocation6], 4294966784  ;;  %v50_v0 = vld [vmem:[#allocation5 + $0x18] sm:$0xff]  ;;  %v49_v1 = vld [vmem:[#allocation5 + $0x10] sm:$0xff]  ;;  %vm55_vm0 = vcmask 261120   ;;  %s189_s24 = smov [#allocation7]  }
   0xc   :  { %71 = vmatpush.msra.mxu0 %v50_v0  ;;  %v45_v2 = vld [vmem:[#allocation2] sm:$0xff]  ;;  %v48_v3 = vld [vmem:[#allocation5 + $0x8] sm:$0xff]  ;;  %v47_v4 = vld [vmem:[#allocation5] sm:$0xff]  ;;  %s85_s25 = sshll.u32 %s189_s24, 4  ;;  %s87_s28 = sshll.u32 %s225_s3, 4  ;;  %s86_s25 = int_to_ptr.vmem [resolvable:$true] %s85_s25  ;;  %s88_s28 = int_to_ptr.hbm [resolvable:$true] %s87_s28 }
   0xd   :  { %105 = vtanh.f32 %v45_v2  ;;  %v104_v6 = vld [vmem:[%s224_s2] ss:$0 sm:$0xff] }
   0xe   :  { %72 = vmatpush.msra.mxu0 %v49_v1 }
  0x10   :  { %73 = vmatpush.msra.mxu0 %v48_v3 }
  0x12   :  { %74 = vmatpush.msra.mxu0 %v47_v4 }
  0x13   :  { %v106_v5 = vpop.eup %105 }
  0x14   :  { %98 = vmatmul.msk.f32.vlgmr.msra.gmra.mxu0 %vm55_vm0, %v106_v5 }
  0x91   :  { %v76_v7 = vpop.f32.mrf.mxu0 }
  0x92   :  { %v77_v8 = vadd.f32 %v104_v6, %v76_v7 }
  0x94   :  { %79 = vst.msk [vmem:[#allocation7] sm:$0xff] %vm55_vm0, %v77_v8 }
  0x95   :  { %90 = dma.vmem_to_hbm [thread:$0]  %s86_s25, 128, %s88_s28, [#allocation4]  }
  0x96   :  { %183 = dma.done.wait [#allocation4], 128  }
  0x97   :  { %184 = vsyncadd [#allocation4], 4294967168 }
  0x98   :  { %95 = vsyncpa [#allocation3], 1 }
  0x99   :  { %96 = vsyncpa [#allocation6], 1 }
  0x9a   :  { %97 = vsyncpa [#allocation4], 1 }

</bundles_post_ra>
